<compile_context>
chip_gen: v7x
topology: tpu7x:2x2x1
jax: 0.10.0
libtpu: 0.0.40
codegen_flags: <defaults>
</compile_context>

<pallas_src>
import functools

import jax
import jax.numpy as jnp
from jax.experimental import pallas as pl
from jax.experimental.pallas import tpu as pltpu


def _round_up(v, m):
    return (v + m - 1) // m * m


@functools.lru_cache(maxsize=1)
def _device_kind():
    try:
        return jax.devices()[0].device_kind.lower()
    except Exception:
        return ""


def _vmem_limit_bytes():
    """Generation-aware scoped-VMEM request."""
    k = _device_kind()
    if "v5" in k or "v6" in k:
        return 100 << 20        # 128 MiB physical VMEM: allow big tiles
    if "v7" in k:
        return 56 << 20         # 64 MiB / TC physical on v7x
    return 48 << 20             # unknown: conservative


def _tile_budget():
    return _vmem_limit_bytes() - (8 << 20)


def _tco_max():
    k = _device_kind()
    if "v5" in k or "v6" in k:
        return 512              # single Cout block for the 512-ch layers
    return 256                  # v7x / unknown: tighter VMEM


# ----------------------------------------------------------------------------
# Convolution kernels (stride 1, "same" padding + row-halo done by the
# wrapper, arbitrary dilation, fused bias + optional ReLU).
# Taps are folded into the MXU K dimension (im2col in VMEM).
# ----------------------------------------------------------------------------
def _conv_kernel_direct(x_ref, w_ref, b_ref, o_ref, *, TH, W, KH, KW, dil,
                        relu, fold_all):
    """Single-Cout-block path: build the patch inline, no scratch."""
    Cin = x_ref.shape[-1]
    Tco = o_ref.shape[-1]

    def tap(ky, kx):
        return x_ref[0, ky * dil:ky * dil + TH, kx * dil:kx * dil + W, :]

    if fold_all:
        taps = [tap(ky, kx) for ky in range(KH) for kx in range(KW)]
        patch = taps[0] if len(taps) == 1 else jnp.concatenate(taps, axis=-1)
        acc = jnp.dot(patch.reshape(TH * W, KH * KW * Cin), w_ref[...],
                      preferred_element_type=jnp.float32)
    else:
        # Fold only the kx taps (K = KW*Cin per matmul); accumulate over ky.
        acc = None
        for ky in range(KH):
            taps = [tap(ky, kx) for kx in range(KW)]
            patch = taps[0] if KW == 1 else jnp.concatenate(taps, axis=-1)
            d = jnp.dot(patch.reshape(TH * W, KW * Cin),
                        w_ref[ky * KW * Cin:(ky + 1) * KW * Cin, :],
                        preferred_element_type=jnp.float32)
            acc = d if acc is None else acc + d

    acc = acc + b_ref[...]                 # (1, Tco) broadcasts over rows
    if relu:
        acc = jnp.maximum(acc, 0.0)
    o_ref[...] = acc.reshape(1, TH, W, Tco).astype(o_ref.dtype)


def _conv_kernel_scratch(x_ref, w_ref, b_ref, o_ref, patch_ref, *, TH, W, KH,
                         KW, dil, relu):
    """Multi-Cout-block path: im2col patch built once per row tile (co == 0)
    into VMEM scratch and reused for every Cout block."""
    Cin = x_ref.shape[-1]
    Tco = o_ref.shape[-1]

    @pl.when(pl.program_id(1) == 0)
    def _build_patch():
        for ky in range(KH):
            taps = [x_ref[0, ky * dil:ky * dil + TH, kx * dil:kx * dil + W, :]
                    for kx in range(KW)]
            slab = taps[0] if KW == 1 else jnp.concatenate(taps, axis=-1)
            patch_ref[:, ky * KW * Cin:(ky + 1) * KW * Cin] = (
                slab.reshape(TH * W, KW * Cin))

    acc = jnp.dot(patch_ref[...], w_ref[...],
                  preferred_element_type=jnp.float32)
    acc = acc + b_ref[...]
    if relu:
        acc = jnp.maximum(acc, 0.0)
    o_ref[...] = acc.reshape(1, TH, W, Tco).astype(o_ref.dtype)


def _pick_conv_tile_h(*, H, W, pad, Cin, K, K_dot, kslab, Tco, use_scratch,
                      budget):
    """Largest row tile whose per-step VMEM footprint (with TPU tiled-layout
    padding: last dim -> 128 lanes, second-to-last -> 16 sublanes for bf16)
    fits the budget."""
    Cin_e = _round_up(Cin, 128)
    Wp = W + 2 * pad

    def footprint(th):
        thp = th + 2 * pad
        in_b = 2 * thp * _round_up(Wp, 16) * Cin_e * 2        # bf16, dbl-buf
        w_b = 2 * _round_up(K, 16) * Tco * 2                  # bf16, dbl-buf
        out_b = 2 * th * _round_up(W, 16) * Tco * 2           # bf16, dbl-buf
        rows = _round_up(th * W, 16)
        acc_b = rows * Tco * 4                                # f32 matmul acc
        if use_scratch:
            patch_b = rows * _round_up(K, 128) * 2            # persistent
            patch_b += th * _round_up(W, 16) * _round_up(kslab, 128) * 2
        else:
            patch_b = 2 * rows * _round_up(K_dot, 128) * 2    # transient
        return in_b + w_b + out_b + acc_b + patch_b

    th = H
    while th > 8 and footprint(th) > budget:
        th = (th + 1) // 2
    return th


def conv2d(x, w, b, *, dilation=1, relu=True, out_dtype=jnp.bfloat16):
    """x: (N, H, W, Cin); w: (KH, KW, Cin, Cout); b: (Cout,)."""
    N, H, W, Cin = x.shape
    KH, KW, _, Cout = w.shape
    pad = dilation * (KH // 2)              # matches the module's padding

    # Lane-dense output channels: pad Cout to a multiple of 128 (sliced below).
    Cout_p = _round_up(Cout, 128)
    if Cout_p != Cout:
        w = jnp.pad(w, ((0, 0), (0, 0), (0, 0), (0, Cout_p - Cout)))
        b = jnp.pad(b, ((0, Cout_p - Cout),))
    Tco = min(Cout_p, _tco_max())
    n_co = Cout_p // Tco

    K = KH * KW * Cin
    fold_all = K <= 1152                    # shallow Cin: fold all taps
    K_dot = K if fold_all else KW * Cin
    use_scratch = (n_co > 1) and (KH * KW > 1)

    wr = w.reshape(K, Cout_p).astype(jnp.bfloat16)
    br = b.reshape(1, Cout_p).astype(jnp.float32)

    vmem_limit = _vmem_limit_bytes()
    TH = _pick_conv_tile_h(H=H, W=W, pad=pad, Cin=Cin, K=K, K_dot=K_dot,
                           kslab=KW * Cin, Tco=Tco, use_scratch=use_scratch,
                           budget=_tile_budget())
    nH = pl.cdiv(H, TH)
    extra = nH * TH - H

    xp = jnp.pad(x.astype(jnp.bfloat16),
                 ((0, 0), (pad, pad + extra), (pad, pad), (0, 0)))
    Wp = W + 2 * pad
    THp = TH + 2 * pad
    # Overlapping row tiles (halo = pad rows each side), merged with batch.
    if nH == 1:
        xt = xp                                             # (N, THp, Wp, Cin)
    else:
        # TODO(synk): overlapping-slice stack costs one extra HBM round trip;
        # an in-kernel halo DMA from HBM would remove it.
        xt = jnp.stack([xp[:, i * TH:i * TH + THp] for i in range(nH)], axis=1)
        xt = xt.reshape(N * nH, THp, Wp, Cin)

    common = dict(TH=TH, W=W, KH=KH, KW=KW, dil=dilation, relu=relu)
    if use_scratch:
        kern = functools.partial(_conv_kernel_scratch, **common)
        scratch = [pltpu.VMEM((TH * W, K), jnp.bfloat16)]
        dims = ("parallel", "arbitrary")    # co must run in-order per tile
    else:
        kern = functools.partial(_conv_kernel_direct, fold_all=fold_all,
                                 **common)
        scratch = []
        dims = ("parallel", "parallel")

    out = pl.pallas_call(
        kern,
        out_shape=jax.ShapeDtypeStruct((N * nH, TH, W, Cout_p), out_dtype),
        grid_spec=pltpu.PrefetchScalarGridSpec(
            num_scalar_prefetch=0,
            grid=(N * nH, n_co),
            in_specs=[
                pl.BlockSpec((1, THp, Wp, Cin), lambda t, co: (t, 0, 0, 0)),
                pl.BlockSpec((K, Tco), lambda t, co: (0, co)),
                pl.BlockSpec((1, Tco), lambda t, co: (0, co)),
            ],
            out_specs=pl.BlockSpec((1, TH, W, Tco), lambda t, co: (t, 0, 0, co)),
            scratch_shapes=scratch,
        ),
        compiler_params=pltpu.CompilerParams(
            dimension_semantics=dims,
            vmem_limit_bytes=vmem_limit),
    )(xt, wr, br)

    out = out.reshape(N, nH * TH, W, Cout_p)
    if extra or Cout_p != Cout:
        out = out[:, :H, :, :Cout]
    return out


# ----------------------------------------------------------------------------
# 3x3 max pooling, padding=1, stride in {1, 2}; row-tiled with a 1-row halo.
# Separable strided 3-tap max (subsample folded into both passes).
# ----------------------------------------------------------------------------
def _maxpool_kernel(x_ref, o_ref, *, THo, Wo, stride):
    x = x_ref[0]                                        # (THi, W+2, C)
    s = stride
    hi = (THo - 1) * s + 1
    mh = jnp.maximum(jnp.maximum(x[0:hi:s], x[1:hi + 1:s]), x[2:hi + 2:s])
    wi = (Wo - 1) * s + 1
    m = jnp.maximum(jnp.maximum(mh[:, 0:wi:s], mh[:, 1:wi + 1:s]),
                    mh[:, 2:wi + 2:s])
    o_ref[...] = m[None].astype(o_ref.dtype)


def max_pool(x, *, stride):
    N, H, W, C = x.shape
    Ho = (H - 1) // stride + 1
    Wo = (W - 1) // stride + 1
    Wp = W + 2
    elt = 2  # bf16 activations
    budget = _tile_budget()
    Ce = _round_up(C, 128)

    def footprint(tho):
        thi = (tho - 1) * stride + 3
        in_b = 2 * thi * _round_up(Wp, 16) * Ce * elt
        out_b = 2 * tho * _round_up(Wo, 16) * Ce * elt
        tmp = 2 * tho * _round_up(Wp, 16) * Ce * elt
        return in_b + out_b + tmp

    THo = Ho
    while THo > 8 and footprint(THo) > budget:
        THo = (THo + 1) // 2
    nT = pl.cdiv(Ho, THo)
    THi = (THo - 1) * stride + 3
    rows_needed = (nT * THo - 1) * stride + 3
    extra = max(rows_needed - (H + 2), 0)

    xp = jnp.pad(x, ((0, 0), (1, 1 + extra), (1, 1), (0, 0)),
                 constant_values=-jnp.inf)
    if nT == 1:
        xt = xp[:, :THi]
    else:
        xt = jnp.stack([xp[:, i * THo * stride: i * THo * stride + THi]
                        for i in range(nT)], axis=1)
        xt = xt.reshape(N * nT, THi, Wp, C)

    kern = functools.partial(_maxpool_kernel, THo=THo, Wo=Wo, stride=stride)
    out = pl.pallas_call(
        kern,
        out_shape=jax.ShapeDtypeStruct((N * nT, THo, Wo, C), x.dtype),
        grid_spec=pltpu.PrefetchScalarGridSpec(
            num_scalar_prefetch=0,
            grid=(N, nT),
            in_specs=[pl.BlockSpec((1, THi, Wp, C),
                                   lambda n, t, nT=nT: (n * nT + t, 0, 0, 0))],
            out_specs=pl.BlockSpec((1, THo, Wo, C),
                                   lambda n, t, nT=nT: (n * nT + t, 0, 0, 0)),
        ),
        compiler_params=pltpu.CompilerParams(
            dimension_semantics=("parallel", "parallel"),
            vmem_limit_bytes=_vmem_limit_bytes()),
    )(xt)
    out = out.reshape(N, nT * THo, Wo, C)
    if nT * THo != Ho:
        out = out[:, :Ho]
    return out


# ----------------------------------------------------------------------------
# Fused MaxPool(3, s1, p1) -> AvgPool(3, s1, p1) (block-5 tail); row-tiled
# with a 2-row halo.  AvgPool matches PyTorch's default count_include_pad=True:
# the *max output* is zero-padded and divided by 9.  Separable averaging.
# ----------------------------------------------------------------------------
def _maxavg_kernel(x_ref, o_ref, *, TH, W, H):
    t = pl.program_id(1)
    x = x_ref[0].astype(jnp.float32)                    # (TH+4, W+4, C)
    # stride-1 3x3 max over the extended region: (TH+2, W+2, C)
    mh = jnp.maximum(jnp.maximum(x[0:TH + 2], x[1:TH + 3]), x[2:TH + 4])
    m = jnp.maximum(jnp.maximum(mh[:, 0:W + 2], mh[:, 1:W + 3]),
                    mh[:, 2:W + 4])
    # AvgPool sees the max output zero-padded by 1: zero the *global* ring.
    base = t * TH
    r = base + jax.lax.broadcasted_iota(jnp.int32, (TH + 2, W + 2, 1), 0)
    c = jax.lax.broadcasted_iota(jnp.int32, (TH + 2, W + 2, 1), 1)
    interior = (r >= 1) & (r <= H) & (c >= 1) & (c <= W)
    m = jnp.where(interior, m, 0.0)
    # Separable 3x3 average: row-sum then col-sum (4 adds instead of 8).
    sh = m[0:TH] + m[1:TH + 1] + m[2:TH + 2]            # (TH, W+2, C)
    sm = sh[:, 0:W] + sh[:, 1:W + 1] + sh[:, 2:W + 2]   # (TH, W, C)
    o_ref[...] = (sm * (1.0 / 9.0))[None].astype(o_ref.dtype)


def max_avg_pool(x):
    N, H, W, C = x.shape
    Wp = W + 4
    budget = _tile_budget()
    Ce = _round_up(C, 128)

    def footprint(th):
        thi = th + 4
        in_b = 2 * thi * _round_up(Wp, 16) * Ce * 2          # bf16 blocks
        out_b = 2 * th * _round_up(W, 16) * Ce * 2
        tmp = 3 * thi * _round_up(Wp, 16) * Ce * 4            # f32 transients
        return in_b + out_b + tmp

    TH = H
    while TH > 8 and footprint(TH) > budget:
        TH = (TH + 1) // 2
    nT = pl.cdiv(H, TH)
    extra = nT * TH - H
    THi = TH + 4

    xp = jnp.pad(x, ((0, 0), (2, 2 + extra), (2, 2), (0, 0)),
                 constant_values=-jnp.inf)
    if nT == 1:
        xt = xp
    else:
        xt = jnp.stack([xp[:, i * TH: i * TH + THi] for i in range(nT)], axis=1)
        xt = xt.reshape(N * nT, THi, Wp, C)

    kern = functools.partial(_maxavg_kernel, TH=TH, W=W, H=H)
    out = pl.pallas_call(
        kern,
        out_shape=jax.ShapeDtypeStruct((N * nT, TH, W, C), x.dtype),
        grid_spec=pltpu.PrefetchScalarGridSpec(
            num_scalar_prefetch=0,
            grid=(N, nT),
            in_specs=[pl.BlockSpec((1, THi, Wp, C),
                                   lambda n, t, nT=nT: (n * nT + t, 0, 0, 0))],
            out_specs=pl.BlockSpec((1, TH, W, C),
                                   lambda n, t, nT=nT: (n * nT + t, 0, 0, 0)),
        ),
        compiler_params=pltpu.CompilerParams(
            dimension_semantics=("parallel", "parallel"),
            vmem_limit_bytes=_vmem_limit_bytes()),
    )(xt)
    out = out.reshape(N, nT * TH, W, C)
    if extra:
        out = out[:, :H]
    return out


# ----------------------------------------------------------------------------
# Stem: wrapper-side im2col so the Pallas lane dim is 27 (not 3).
# ----------------------------------------------------------------------------
def _stem_im2col(x):
    """x: (N, H, W, 3) -> (N, H, W, 27) 3x3 zero-padded taps, (ky, kx, cin)."""
    N, H, W, _ = x.shape
    xp = jnp.pad(x, ((0, 0), (1, 1), (1, 1), (0, 0)))
    taps = [xp[:, dy:dy + H, dx:dx + W, :] for dy in range(3) for dx in range(3)]
    return jnp.concatenate(taps, axis=-1)


# ----------------------------------------------------------------------------
# Parameters (deterministic synthetic init; shapes match the PyTorch module).
# ----------------------------------------------------------------------------
def init_params(key, num_classes=21):
    cfg = [  # (Cin, Cout, K)   -- 13 backbone convs + fc6/fc7/fc8
        (3, 64, 3), (64, 64, 3),
        (64, 128, 3), (128, 128, 3),
        (128, 256, 3), (256, 256, 3), (256, 256, 3),
        (256, 512, 3), (512, 512, 3), (512, 512, 3),
        (512, 512, 3), (512, 512, 3), (512, 512, 3),
        (512, 1024, 3), (1024, 1024, 1), (1024, num_classes, 1),
    ]
    keys = jax.random.split(key, len(cfg))
    params = []
    for i, ((cin, cout, k), kk) in enumerate(zip(cfg, keys)):
        if i == len(cfg) - 1:
            std = 0.01          # matches nn.init.normal_(features.38, std=0.01)
        else:
            std = (2.0 / (k * k * cin)) ** 0.5   # He-style, keeps activations sane
        w = std * jax.random.normal(kk, (k, k, cin, cout), jnp.float32)
        b = jnp.zeros((cout,), jnp.float32)      # features.38 bias = 0.0
        params.append((w, b))
    return params


# ----------------------------------------------------------------------------
# Forward pass (split='train': no bilinear upsample at the end).
# ----------------------------------------------------------------------------
def vgg16_largefov_forward(params, x_nchw):
    x = jnp.transpose(x_nchw, (0, 2, 3, 1)).astype(jnp.bfloat16)  # NCHW -> NHWC

    def conv(x, i, dilation=1, relu=True, out_dtype=jnp.bfloat16):
        w, b = params[i]
        return conv2d(x, w, b, dilation=dilation, relu=relu, out_dtype=out_dtype)

    # block 1 (stem: im2col in the wrapper, then a 1x1 conv over 27 channels)
    w0, b0 = params[0]
    x = conv2d(_stem_im2col(x), w0.reshape(1, 1, 27, w0.shape[-1]), b0)
    x = conv(x, 1)
    x = max_pool(x, stride=2)
    # block 2
    x = conv(x, 2); x = conv(x, 3)
    x = max_pool(x, stride=2)
    # block 3
    x = conv(x, 4); x = conv(x, 5); x = conv(x, 6)
    x = max_pool(x, stride=2)
    # block 4
    x = conv(x, 7); x = conv(x, 8); x = conv(x, 9)
    x = max_pool(x, stride=1)
    # block 5 (dilation 2)
    x = conv(x, 10, dilation=2); x = conv(x, 11, dilation=2); x = conv(x, 12, dilation=2)
    x = max_avg_pool(x)           # fused MaxPool(3,s1,p1) + AvgPool(3,s1,p1)
    # fc6 (dilation 12) / fc7 / fc8
    x = conv(x, 13, dilation=12)
    # TODO(synk): nn.Dropout2d(0.5) is stochastic in train mode; treated as identity (eval semantics).
    x = conv(x, 14)
    # Dropout2d again -> identity (see above).
    x = conv(x, 15, relu=False, out_dtype=jnp.float32)
    # split == 'test' bilinear upsample not exercised for split='train'.
    return jnp.transpose(x, (0, 3, 1, 2))                         # NHWC -> NCHW


if __name__ == "__main__":
    key = jax.random.PRNGKey(0)
    pkey, xkey = jax.random.split(key)
    params = init_params(pkey, num_classes=21)

    # Small input consistent with the module: NCHW, 3 input channels.
    x = jax.random.normal(xkey, (2, 3, 16, 16), jnp.float32)

    out = vgg16_largefov_forward(params, x)
    out = jax.block_until_ready(out)

    # 16 -> 8 -> 4 -> 2 through the three stride-2 pools; 21 classes.
    assert out.shape == (2, 21, 2, 2), out.shape
    assert bool(jnp.all(jnp.isfinite(out)))
    print("KERNEL_OK")
</pallas_src>

<mosaic_0001>
module attributes {stable_mosaic.version = 11 : i64} {
  func.func @_conv_kernel_direct(%arg0: i32, %arg1: i32, %arg2: memref<1x16x16x27xbf16, #tpu.memory_space<vmem>>, %arg3: memref<27x128xbf16, #tpu.memory_space<vmem>>, %arg4: memref<1x128xf32, #tpu.memory_space<vmem>>, %arg5: memref<1x16x16x128xbf16, #tpu.memory_space<vmem>>) attributes {dimension_semantics = [#tpu.dimension_semantics<parallel>, #tpu.dimension_semantics<parallel>], iteration_bounds = array<i64: 2, 1>, scalar_prefetch = 0 : i64, scratch_operands = 0 : i64, tpu.core_type = #tpu.core_type<tc>, window_params = [{transform_indices = @transform_0, window_bounds = array<i64: 1, 16, 16, 27>}, {transform_indices = @transform_1, window_bounds = array<i64: 27, 128>}, {transform_indices = @transform_2, window_bounds = array<i64: 1, 128>}, {transform_indices = @transform_3, window_bounds = array<i64: 1, 16, 16, 128>}]} {
    %c0 = arith.constant 0 : index
    %c0_0 = arith.constant 0 : index
    %c0_1 = arith.constant 0 : index
    %c0_2 = arith.constant 0 : index
    %0 = vector.load %arg2[%c0, %c0_0, %c0_1, %c0_2] : memref<1x16x16x27xbf16, #tpu.memory_space<vmem>>, vector<1x16x16x27xbf16>
    %1 = vector.shape_cast %0 : vector<1x16x16x27xbf16> to vector<16x16x27xbf16>
    %2 = vector.shape_cast %1 : vector<16x16x27xbf16> to vector<256x27xbf16>
    %c0_3 = arith.constant 0 : index
    %c0_4 = arith.constant 0 : index
    %3 = vector.load %arg3[%c0_3, %c0_4] : memref<27x128xbf16, #tpu.memory_space<vmem>>, vector<27x128xbf16>
    %cst = arith.constant dense<0.000000e+00> : vector<256x128xf32>
    %4 = tpu.matmul %2, %3, %cst {dimension_numbers = #tpu.dot_dimension_numbers<[1], [0], [0], [1], [0, 0, 1, 1], [], []>} : vector<256x27xbf16>, vector<27x128xbf16>, vector<256x128xf32> -> vector<256x128xf32>
    %c0_5 = arith.constant 0 : index
    %c0_6 = arith.constant 0 : index
    %5 = vector.load %arg4[%c0_5, %c0_6] : memref<1x128xf32, #tpu.memory_space<vmem>>, vector<1x128xf32>
    %6 = vector.broadcast %5 : vector<1x128xf32> to vector<256x128xf32>
    %7 = arith.addf %4, %6 : vector<256x128xf32>
    %cst_7 = arith.constant 0.000000e+00 : f32
    %8 = vector.broadcast %cst_7 : f32 to vector<256x128xf32>
    %9 = arith.maximumf %7, %8 : vector<256x128xf32>
    %10 = vector.shape_cast %9 : vector<256x128xf32> to vector<1x16x16x128xf32>
    %11 = arith.truncf %10 : vector<1x16x16x128xf32> to vector<1x16x16x128xbf16>
    %c0_8 = arith.constant 0 : index
    %c0_9 = arith.constant 0 : index
    %c0_10 = arith.constant 0 : index
    %c0_11 = arith.constant 0 : index
    %12 = vector.load %arg5[%c0_8, %c0_9, %c0_10, %c0_11] : memref<1x16x16x128xbf16, #tpu.memory_space<vmem>>, vector<1x16x16x128xbf16>
    tpu.vector_store %arg5[%c0_8, %c0_9, %c0_10, %c0_11], %11 {strides = array<i32>} : memref<1x16x16x128xbf16, #tpu.memory_space<vmem>>, vector<1x16x16x128xbf16>,
    return
  }
  func.func @transform_0(%arg0: i32, %arg1: i32) -> (i32, i32, i32, i32) {
    %c0_i32 = arith.constant 0 : i32
    %c0_i32_0 = arith.constant 0 : i32
    %c0_i32_1 = arith.constant 0 : i32
    %c0_i32_2 = arith.constant 0 : i32
    return %arg0, %c0_i32, %c0_i32_0, %c0_i32_1 : i32, i32, i32, i32
  }
  func.func @transform_1(%arg0: i32, %arg1: i32) -> (i32, i32) {
    %c0_i32 = arith.constant 0 : i32
    %c0_i32_0 = arith.constant 0 : i32
    return %c0_i32, %arg1 : i32, i32
  }
  func.func @transform_2(%arg0: i32, %arg1: i32) -> (i32, i32) {
    %c0_i32 = arith.constant 0 : i32
    %c0_i32_0 = arith.constant 0 : i32
    return %c0_i32, %arg1 : i32, i32
  }
  func.func @transform_3(%arg0: i32, %arg1: i32) -> (i32, i32, i32, i32) {
    %c0_i32 = arith.constant 0 : i32
    %c0_i32_0 = arith.constant 0 : i32
    %c0_i32_1 = arith.constant 0 : i32
    return %arg0, %c0_i32, %c0_i32_0, %arg1 : i32, i32, i32, i32
  }
}

</mosaic_0001>

<bundles_post_ra>
// kernel: tpu_custom_call.1
= control target key start
LH: loop header
LB: loop body
LE: loop exit
PB: predicated region body
PF: predicated region fallthrough
CT: control target
= control target key end

     0   :  { %8 = vsyncpa [#allocation3], 0  ;;  %s1766_s0 = inlined_call_operand.hbm [shape: bf16[2,16,16,27], index: 0, kind: input, shape index: {}]   ;;  %s1767_s1 = inlined_call_operand.hbm [shape: bf16[27,128], index: 1, kind: input, shape index: {}]   ;;  %s1768_s2 = inlined_call_operand.vmem [shape: f32[1,128], index: 2, kind: input, shape index: {}]   ;;  %s1769_s3 = inlined_call_operand.hbm [shape: bf16[2,16,16,128], index: 3, kind: output, shape index: {}]  }
   0x1   :  { %10 = vsyncpa [#allocation3 + $0x1], 0 }
   0x2   :  { %11 = vsyncpa [#allocation6], 0 }
   0x3   :  { %12 = vsyncpa [#allocation4], 0 }
   0x4   :  { %14 = vsyncpa [#allocation4 + $0x1], 0  ;;  %s1447_s12 = smov 0   ;;  %s1449_s13 = smov 0  }
   0x5   :  { %s1451_s14 = smov 0   ;;  %s1453_s15 = smov 0  }
   0x6   :  { %s1455_s16 = smov 0   ;;  %s1457_s17 = smov 0  }
   0x7 LB: > { %s905_s18 = sadd.s32 4294967295, %s1417_s17   ;;  %s906_s19 = sadd.s32 4294967294, %s1417_s17   ;;  %s1417_s17 = sphi %s1457_s17, %s20_s17   ;;  %s1413_s16 = sphi %s1455_s16, %s1793_s16   ;;  %s1409_s15 = sphi %s1453_s15, %s1792_s15   ;;  %s1405_s14 = sphi %s1451_s14, %s1791_s14   ;;  %s1401_s13 = sphi %s1449_s13, %s1790_s13   ;;  %s1397_s12 = sphi %s1447_s12, %s1789_s12  }
   0x8   : > { %p52_p0 = scmp.ne.s32.totalorder %s1401_s13, %s1397_s12  ;;  %p1481_p1 = scmp.eq.s32.totalorder %s905_s18, 0 }
   0x9   : > { %p1485_p2 = scmp.eq.s32.totalorder %s905_s18, 1  ;;  %p136_p3 = scmp.eq.s32.totalorder %s906_s19, 1 }
   0xa   : > { %s1774_s20 = scalar_select %p1481_p1, 1, 0 }
   0xb   : > { %s1775_s21 = scalar_select %p1485_p2, 1, 0 }
   0xc   : > { %p1491_p4 = por %p1481_p1, %p52_p0  ;;  %p907_p5 = scmp.ge.s32.totalorder %s1417_s17, 1 }
   0xd   : > { %p1496_p6 = por %p136_p3, %p52_p0  ;;  %p143_p7 = scmp.lt.s32.totalorder %s1417_s17, 3 }
   0xe   : > { %s1776_s22 = scalar_select %p1491_p4, 1, 0 }
   0xf   : > { %s1777_s23 = scalar_select %p1496_p6, 1, 0 }
  0x10   : > { %p1501_p8 = pnand %p907_p5, %p143_p7  ;;  %s1419_s25 = smov [#allocation5]  }
  0x11   : > { %s157_s26 = sshll.u32 %s1419_s25, 4  ;;  %s32_s28 = sadd.s32 1, %s1413_s16  ;;  %s158_s26 = int_to_ptr.vmem [resolvable:$true] %s157_s26 }
  0x12   : > { %s1778_s24 = scalar_select %p1501_p8, 1, 0 }
  0x13   : > { %p1185_p9 = pneg %p1501_p8  ;;  %s1273_s4 = scalar_lea.hbm %s1767_s1, 256 }
  0x14   : > { %p1274_p12 = scmp.ne.s32.totalorder %s1767_s1, %s1273_s4  ;;  %p1280_p5 = scmp.lt.u32.totalorder %s1273_s4, %s1767_s1 }
  0x15   : > { %p1510_p11 = pnand %p1185_p9, %p1481_p1 }
  0x17   : > { %p1275_p13 = pneg %p1510_p11 }
  0x19   : > { %p1276_p0 = pnand %p1275_p13, %p1274_p12 }
  0x1b   : > { %p1277_p3 = pneg %p1276_p0 }
  0x1d   : > { %p1282_p7 = pnand %p1280_p5, %p1277_p3 }
  0x1f   : > { %1285 = shalt.err (!%p1282_p7)
}
  0x20   : > { %s1286_s9 = scalar_lea.vmem %s158_s26, 256  ;;  %p1294_p1 = scmp.lt.s32.totalorder %s158_s26, %s158_s26 }
  0x21   : > { %p1287_p9 = scmp.ne.s32.totalorder %s158_s26, %s1286_s9  ;;  %p1295_p4 = scmp.lt.s32.totalorder %s1286_s9, %s1286_s9 }
  0x23   : > { %p1289_p10 = pnand %p1287_p9, %p1275_p13  ;;  %p1296_p8 = por %p1295_p4, %p1294_p1 }
  0x25   : > { %p1290_p6 = pneg %p1289_p10 }
  0x27   : > { %p1297_p2 = pnand %p1296_p8, %p1290_p6 }
  0x29   : > { %1300 = shalt.err (!%p1297_p2)
}
  0x2a   : > { %s1420_s10 = smov 64   ;;  %s1421_s11 = smov 4  }
  0x2b   : > { %1188 = dma.hbm_to_vmem [thread:$0]  (!%p1510_p11), %s1767_s1, 256, %s158_s26, [#allocation6], %s1420_s10, %s1420_s10, %s1421_s11  }
  0x2c   : > { %p34_p1 = scmp.ge.s32.totalorder %s32_s28, 2  ;;  %s39_s25 = sadd.s32 1, %s1405_s14 }
  0x2d   : > { %p46_p2 = scmp.ne.s32.totalorder %s1405_s14, %s1401_s13  ;;  %p47_p4 = scmp.eq.s32.totalorder %s1417_s17, 0 }
  0x2e   : > { %s1795_s28 = smov (%p34_p1, %s32_s28), 0  ;;  %p1781_p8 = scmp.ne.s32.totalorder %s1775_s21, 0 }
  0x2f   : > { %p1540_p6 = por %p47_p4, %p46_p2  ;;  %s36_s30 = ssub.s32 %s1413_s16, %s1795_s28 }
  0x30   : > { %p1546_p10 = por %p1781_p8, %p46_p2  ;;  %p1198_p12 = scmp.lt.s32.totalorder %s1417_s17, 2 }
  0x31   : > { %p37_p11 = scmp.eq.s32.totalorder %s36_s30, 0  ;;  %s177_s26 = sand.u32 1, %s1405_s14  }
  0x32   : > { %s911_s4 = sshll.u32 %s177_s26, 7  ;;  %s990_s6 = sshll.u32 %s1413_s16, 11 }
  0x33   : > { %s1555_s5 = scalar_select %p37_p11, %s1405_s14, %s39_s25  }
  0x34   : > { %s1561_s9 = scalar_lea.hbm %s1766_s0, %s990_s6  ;;  %s181_s21 = scalar_lea.vmem [#allocation2], %s911_s4 }
  0x35   : > { %s188_s18 = sshll.u32 %s181_s21, 4  ;;  %p1567_p13 = pnand %p1198_p12, %p1540_p6  ;;  %s1563_s18 = int_to_ptr.vmem [resolvable:$true] %s188_s18 }
  0x36   : > { %s1571_s25 = scalar_lea.sflag [#allocation3], %s177_s26  ;;  %s1301_s30 = scalar_lea.hbm %s1561_s9, 2048 }
  0x37   : > { %p1302_p0 = scmp.ne.s32.totalorder %s1561_s9, %s1301_s30  ;;  %p1303_p3 = pneg %p1567_p13 }
  0x38   : > { %s1306_s29 = scalar_lea.hbm %s1766_s0, 4096  ;;  %p1307_p9 = scmp.lt.u32.totalorder %s1561_s9, %s1766_s0 }
  0x39   : > { %p1304_p5 = pnand %p1303_p3, %p1302_p0  ;;  %p1308_p1 = scmp.lt.u32.totalorder %s1306_s29, %s1301_s30 }
  0x3a   : > { %p1310_p4 = scmp.lt.u32.totalorder %s1301_s30, %s1561_s9 }
  0x3b   : > { %p1305_p7 = pneg %p1304_p5  ;;  %p1309_p2 = por %p1308_p1, %p1307_p9 }
  0x3d   : > { %p1311_p6 = por %p1310_p4, %p1309_p2 }
  0x3f   : > { %p1312_p8 = pnand %p1311_p6, %p1305_p7 }
  0x41   : > { %1315 = shalt.err (!%p1312_p8)
}
  0x42   : > { %s1316_s26 = scalar_lea.vmem %s1563_s18, 2048  ;;  %s1422_s21 = smov [#allocation2]  }
  0x43   : > { %p1317_p12 = scmp.ne.s32.totalorder %s1563_s18, %s1316_s26  ;;  %s1321_s4 = sshll.u32 %s1422_s21, 4  ;;  %s1322_s4 = int_to_ptr.vmem [resolvable:$false] %s1321_s4 }
  0x44   : > { %s1323_s6 = scalar_lea.vmem %s1322_s4, 4096  ;;  %p1324_p5 = scmp.lt.s32.totalorder %s1563_s18, %s1322_s4 }
  0x45   : > { %p1319_p11 = pnand %p1317_p12, %p1303_p3  ;;  %p1325_p9 = scmp.lt.s32.totalorder %s1323_s6, %s1316_s26 }
  0x47   : > { %p1320_p0 = pneg %p1319_p11  ;;  %p1326_p1 = por %p1325_p9, %p1324_p5 }
  0x49   : > { %p1327_p2 = pnand %p1326_p1, %p1320_p0 }
  0x4b   : > { %1330 = shalt.err (!%p1327_p2)
}
  0x4c   : > { %1192 = dma.hbm_to_vmem [thread:$0]  (!%p1567_p13), %s1561_s9, 2048, %s1563_s18, %s1571_s25, %s1420_s10, %s1420_s10, %s1421_s11  }
  0x4d   : > { %p1784_p3 = scmp.ne.s32.totalorder %s1778_s24, 0 }
  0x4e   : > { %s1605_s30 = sand.u32 (!%p1784_p3), 1, %s1401_s13   ;;  %p1785_p7 = scmp.ne.s32.totalorder (!%p1784_p3), %s1776_s22, 0 }
  0x4f   : > { %200 = sbr.rel (%p1784_p3) target bundleno = 360 (0x168), region = 32  ;;  %s915_s29 = sshll.u32 (!%p1784_p3), %s1605_s30, 7 }
  0x50   : > { %s203_s7 = scalar_lea.sflag (!%p1784_p3), [#allocation3], %s1605_s30  ;;  %s1611_s19 = scalar_lea.vmem (!%p1784_p3), [#allocation2], %s915_s29 }
  0x56   : > { %1384 = dma.done.wait (%p1785_p7), %s203_s7, 2048  }
  0x57   : > { %1386 = vsyncadd (%p1785_p7), %s203_s7, 4294965248  ;;  %p1786_p13 = scmp.ne.s32.totalorder %s1774_s20, 0 }
  0x59   : > { %1388 = dma.done.wait (%p1786_p13), [#allocation6], 256  }
  0x5a   : > { %1390 = vsyncadd (%p1786_p13), [#allocation6], 4294967040  ;;  %vm423_vm0 = vcmask 1044480   ;;  %vm424_vm1 = vcmask 1045504   ;;  %v1423_v0 = vmov 65535   ;;  %vm374_vm2 = vcmask 220160  }
  0x5b   : > { %v425_v1 = vsel %vm423_vm0, 4294967295, %v1423_v0  ;;  %v1255_v2 = vld [vmem:[#allocation5] sm:$0xff]   ;;  %v1256_v4 = vld [vmem:[#allocation5 + $0x8] sm:$0x3f]   ;;  %v1261_v10 = vld [vmem:[%s1611_s19 + $0x10] sm:$0xff]   ;;  %s1668_s24 = scalar_lea.vmem [#allocation7], %s915_s29 }
  0x5c   : > { %v426_v3 = vsel %vm424_vm1, %v425_v1, 0  ;;  %1137 = vmatprep.subr.bf16.mxu0 %v1255_v2  ;;  %1173 = vmatprep.subr.bf16.mxu1 %v1255_v2  ;;  %v1257_v5 = vld [vmem:[%s1611_s19] sm:$0xff]   ;;  %v1259_v8 = vld [vmem:[%s1611_s19 + $0x8] sm:$0xff]   ;;  %v1262_v11 = vld [vmem:[%s1611_s19 + $0x50] sm:$0xff]   ;;  %s1023_s10 = sshll.u32 %s1409_s15, 11  ;;  %s798_s11 = sshll.u32 %s1668_s24, 4  ;;  %s1713_s11 = int_to_ptr.vmem [resolvable:$true] %s798_s11 }
  0x5d   : > { %1138 = vmatpush3.bf16.msra.mxu0 %v1255_v2  ;;  %1175 = vmatpush3.bf16.msra.mxu1 %v1255_v2  ;;  %v428_v6 = vand.u32 %v1256_v4, %v426_v3  ;;  %v1258_v7 = vld [vmem:[%s1611_s19 + $0x40] sm:$0xff]   ;;  %v1260_v9 = vld [vmem:[%s1611_s19 + $0x48] sm:$0xff]   ;;  %v1263_v12 = vld [vmem:[%s1611_s19 + $0x18] sm:$0xff]   ;;  %s1711_s15 = scalar_lea.hbm %s1769_s3, %s1023_s10  ;;  %s784_s25 = scalar_lea.sflag [#allocation4], %s1605_s30 }
  0x5e   : > { %1141 = vmatprep.mubr.msk.bf16.mxu0 %vm374_vm2, %v1257_v5  ;;  %1157 = vmatprep.mubr.msk.bf16.mxu1 %vm374_vm2, %v1258_v7  ;;  %v1264_v13 = vld [vmem:[%s1611_s19 + $0x58] sm:$0xff]   ;;  %v1265_v14 = vld [vmem:[%s1611_s19 + $0x20] sm:$0xff]   ;;  %v1267_v16 = vld [vmem:[%s1611_s19 + $0x28] sm:$0xff]   ;;  %s1331_s8 = scalar_lea.vmem %s1713_s11, 2048  ;;  %s1424_s26 = smov [#allocation7]  }
  0x5f   : > { %1139 = vmatprep.subr.bf16.mxu0 %v428_v6  ;;  %1174 = vmatprep.subr.bf16.mxu1 %v428_v6  ;;  %v1266_v15 = vld [vmem:[%s1611_s19 + $0x60] sm:$0xff]   ;;  %v1268_v17 = vld [vmem:[%s1611_s19 + $0x68] sm:$0xff]   ;;  %v1269_v18 = vld [vmem:[%s1611_s19 + $0x30] sm:$0xff]   ;;  %p1332_p4 = scmp.ne.s32.totalorder %s1713_s11, %s1331_s8  ;;  %s1335_s21 = sshll.u32 %s1424_s26, 4  ;;  %s1336_s21 = int_to_ptr.vmem [resolvable:$false] %s1335_s21 }
  0x60   : > { %v1270_v19 = vld [vmem:[%s1611_s19 + $0x70] sm:$0xff]   ;;  %v1271_v20 = vld [vmem:[%s1611_s19 + $0x38] sm:$0xff]   ;;  %v1656_v22 = vld [vmem:[%s1768_s2] ss:$0 sm:$0xff]  ;;  %s1337_s4 = scalar_lea.vmem %s1336_s21, 4096  ;;  %p1338_p12 = scmp.lt.s32.totalorder %s1713_s11, %s1336_s21 }
  0x61   : > { %1140 = vmatpush3.bf16.msra.mxu0 %v428_v6  ;;  %1176 = vmatpush3.bf16.msra.mxu1 %v428_v6  ;;  %v1272_v21 = vld [vmem:[%s1611_s19 + $0x78] sm:$0xff]   ;;  %p1333_p6 = pnand %p1332_p4, %p1546_p10  ;;  %p1339_p11 = scmp.lt.s32.totalorder %s1337_s4, %s1331_s8 }
  0x63   : > { %p1334_p8 = pneg %p1333_p6  ;;  %p1340_p0 = por %p1339_p11, %p1338_p12 }
  0x64   : > { %1142 = vmatmul.mubr.msk.bf16.vlgmr.msra.gmra.mrb[0].mxu0 %vm374_vm2, %v1259_v8  ;;  %1158 = vmatmul.mubr.msk.bf16.vlgmr.msra.gmra.mrb[0].mxu1 %vm374_vm2, %v1260_v9 }
  0x65   : > { %1145 = vmatprep.mubr.msk.bf16.mxu0 %vm374_vm2, %v1261_v10  ;;  %1161 = vmatprep.mubr.msk.bf16.mxu1 %vm374_vm2, %v1262_v11  ;;  %p1341_p5 = pnand %p1340_p0, %p1334_p8 }
  0x6c   : > { %1146 = vmatmul.mubr.msk.bf16.gmra.mrb[4].mxu0 %vm374_vm2, %v1263_v12  ;;  %1162 = vmatmul.mubr.msk.bf16.gmra.mrb[4].mxu1 %vm374_vm2, %v1264_v13 }
  0x6d   : > { %1149 = vmatprep.mubr.msk.bf16.mxu0 %vm374_vm2, %v1265_v14  ;;  %1165 = vmatprep.mubr.msk.bf16.mxu1 %vm374_vm2, %v1266_v15 }
  0x74   : > { %1150 = vmatmul.mubr.msk.bf16.gmra.mrb[8].mxu0 %vm374_vm2, %v1267_v16  ;;  %1166 = vmatmul.mubr.msk.bf16.gmra.mrb[8].mxu1 %vm374_vm2, %v1268_v17 }
  0x75   : > { %1153 = vmatprep.mubr.msk.bf16.mxu0 %vm374_vm2, %v1269_v18  ;;  %1169 = vmatprep.mubr.msk.bf16.mxu1 %vm374_vm2, %v1270_v19 }
  0x7c   : > { %1154 = vmatmul.mubr.msk.bf16.gmra.mrb[12].mxu0 %vm374_vm2, %v1271_v20  ;;  %1170 = vmatmul.mubr.msk.bf16.gmra.mrb[12].mxu1 %vm374_vm2, %v1272_v21 }
 0x137   : > { %v1143_v23 = vpop.f32.mrb[0].mxu0  ;;  %v1159_v24 = vpop.f32.mrb[0].mxu1 }
 0x138   : > { %v473_v25 = vadd.f32 %v1143_v23, %v1656_v22  ;;  %v537_v26 = vadd.f32 %v1159_v24, %v1656_v22  ;;  %v464_v27 = vpop.f32.mrb[1].mxu0  ;;  %v528_v28 = vpop.f32.mrb[1].mxu1 }
 0x139   : > { %v465_v29 = vadd.f32 %v1656_v22, %v464_v27  ;;  %v529_v30 = vadd.f32 %v1656_v22, %v528_v28  ;;  %v1144_v31 = vpop.f32.mrb[2].mxu0  ;;  %v1160_v32 = vpop.f32.mrb[2].mxu1 }
 0x13a   : > { %v476_v33 = vadd.f32 %v1144_v31, %v1656_v22  ;;  %v540_v34 = vadd.f32 %v1160_v32, %v1656_v22  ;;  %v467_v35 = vpop.f32.mrb[3].mxu0  ;;  %v531_v36 = vpop.f32.mrb[3].mxu1  ;;  %v593_v39 = vmax.f32 %v473_v25, 0.0  ;;  %v609_v40 = vmax.f32 %v537_v26, 0.0 }
 0x13b   : > { %v468_v37 = vadd.f32 %v1656_v22, %v467_v35  ;;  %v532_v38 = vadd.f32 %v1656_v22, %v531_v36  ;;  %v591_v43 = vmax.f32 %v465_v29, 0.0  ;;  %v607_v44 = vmax.f32 %v529_v30, 0.0 }
 0x13c   : > { %v594_v41 = vmax.f32 %v476_v33, 0.0  ;;  %v610_v42 = vmax.f32 %v540_v34, 0.0 }
 0x13d   : > { %v592_v45 = vmax.f32 %v468_v37, 0.0  ;;  %v608_v46 = vmax.f32 %v532_v38, 0.0 }
 0x13e   : > { %v1032_v47 = vpack.c.bf16 %v594_v41, %v593_v39  ;;  %v1072_v48 = vpack.c.bf16 %v610_v42, %v609_v40 }
 0x13f   : > { %v1027_v49 = vpack.c.bf16 %v592_v45, %v591_v43  ;;  %v1067_v50 = vpack.c.bf16 %v608_v46, %v607_v44  ;;  %v1147_v51 = vpop.f32.mrb[4].mxu0  ;;  %v1163_v52 = vpop.f32.mrb[4].mxu1 }
 0x140   : > { %1104 = vst [vmem:[%s1668_s24 + $0x8] sm:$0xff] %v1032_v47   ;;  %1112 = vst [vmem:[%s1668_s24 + $0x48] sm:$0xff] %v1072_v48   ;;  %v489_v53 = vadd.f32 %v1147_v51, %v1656_v22  ;;  %v553_v54 = vadd.f32 %v1163_v52, %v1656_v22  ;;  %v480_v55 = vpop.f32.mrb[5].mxu0  ;;  %v544_v56 = vpop.f32.mrb[5].mxu1 }
 0x141   : > { %1028 = vst [vmem:[%s1668_s24] sm:$0xff] %v1027_v49   ;;  %1111 = vst [vmem:[%s1668_s24 + $0x40] sm:$0xff] %v1067_v50   ;;  %v481_v57 = vadd.f32 %v1656_v22, %v480_v55  ;;  %v545_v58 = vadd.f32 %v1656_v22, %v544_v56  ;;  %v1148_v59 = vpop.f32.mrb[6].mxu0  ;;  %v1164_v60 = vpop.f32.mrb[6].mxu1 }
 0x142   : > { %v492_v61 = vadd.f32 %v1148_v59, %v1656_v22  ;;  %v556_v62 = vadd.f32 %v1164_v60, %v1656_v22  ;;  %v483_v63 = vpop.f32.mrb[7].mxu0  ;;  %v547_v0 = vpop.f32.mrb[7].mxu1  ;;  %v597_v3 = vmax.f32 %v489_v53, 0.0  ;;  %v613_v4 = vmax.f32 %v553_v54, 0.0 }
 0x143   : > { %v484_v1 = vadd.f32 %v1656_v22, %v483_v63  ;;  %v548_v2 = vadd.f32 %v1656_v22, %v547_v0  ;;  %v595_v7 = vmax.f32 %v481_v57, 0.0  ;;  %v611_v8 = vmax.f32 %v545_v58, 0.0 }
 0x144   : > { %v598_v5 = vmax.f32 %v492_v61, 0.0  ;;  %v614_v6 = vmax.f32 %v556_v62, 0.0 }
 0x145   : > { %v596_v9 = vmax.f32 %v484_v1, 0.0  ;;  %v612_v10 = vmax.f32 %v548_v2, 0.0 }
 0x146   : > { %v1042_v11 = vpack.c.bf16 %v598_v5, %v597_v3  ;;  %v1082_v12 = vpack.c.bf16 %v614_v6, %v613_v4 }
 0x147   : > { %v1037_v13 = vpack.c.bf16 %v596_v9, %v595_v7  ;;  %v1077_v14 = vpack.c.bf16 %v612_v10, %v611_v8  ;;  %v1151_v15 = vpop.f32.mrb[8].mxu0  ;;  %v1167_v16 = vpop.f32.mrb[8].mxu1 }
 0x148   : > { %1106 = vst [vmem:[%s1668_s24 + $0x18] sm:$0xff] %v1042_v11   ;;  %1114 = vst [vmem:[%s1668_s24 + $0x58] sm:$0xff] %v1082_v12   ;;  %v505_v17 = vadd.f32 %v1151_v15, %v1656_v22  ;;  %v569_v18 = vadd.f32 %v1167_v16, %v1656_v22  ;;  %v496_v19 = vpop.f32.mrb[9].mxu0  ;;  %v560_v20 = vpop.f32.mrb[9].mxu1 }
 0x149   : > { %1105 = vst [vmem:[%s1668_s24 + $0x10] sm:$0xff] %v1037_v13   ;;  %1113 = vst [vmem:[%s1668_s24 + $0x50] sm:$0xff] %v1077_v14   ;;  %v497_v21 = vadd.f32 %v1656_v22, %v496_v19  ;;  %v561_v23 = vadd.f32 %v1656_v22, %v560_v20  ;;  %v1152_v24 = vpop.f32.mrb[10].mxu0  ;;  %v1168_v25 = vpop.f32.mrb[10].mxu1 }
 0x14a   : > { %v508_v26 = vadd.f32 %v1152_v24, %v1656_v22  ;;  %v572_v27 = vadd.f32 %v1168_v25, %v1656_v22  ;;  %v499_v28 = vpop.f32.mrb[11].mxu0  ;;  %v563_v29 = vpop.f32.mrb[11].mxu1  ;;  %v601_v32 = vmax.f32 %v505_v17, 0.0  ;;  %v617_v33 = vmax.f32 %v569_v18, 0.0 }
 0x14b   : > { %v500_v30 = vadd.f32 %v1656_v22, %v499_v28  ;;  %v564_v31 = vadd.f32 %v1656_v22, %v563_v29  ;;  %v599_v36 = vmax.f32 %v497_v21, 0.0  ;;  %v615_v37 = vmax.f32 %v561_v23, 0.0 }
 0x14c   : > { %v602_v34 = vmax.f32 %v508_v26, 0.0  ;;  %v618_v35 = vmax.f32 %v572_v27, 0.0 }
 0x14d   : > { %v600_v38 = vmax.f32 %v500_v30, 0.0  ;;  %v616_v39 = vmax.f32 %v564_v31, 0.0 }
 0x14e   : > { %v1052_v40 = vpack.c.bf16 %v602_v34, %v601_v32  ;;  %v1092_v41 = vpack.c.bf16 %v618_v35, %v617_v33 }
 0x14f   : > { %v1047_v42 = vpack.c.bf16 %v600_v38, %v599_v36  ;;  %v1087_v43 = vpack.c.bf16 %v616_v39, %v615_v37  ;;  %v1155_v44 = vpop.f32.mrb[12].mxu0  ;;  %v1171_v45 = vpop.f32.mrb[12].mxu1 }
 0x150   : > { %1108 = vst [vmem:[%s1668_s24 + $0x28] sm:$0xff] %v1052_v40   ;;  %1116 = vst [vmem:[%s1668_s24 + $0x68] sm:$0xff] %v1092_v41   ;;  %v521_v46 = vadd.f32 %v1155_v44, %v1656_v22  ;;  %v585_v47 = vadd.f32 %v1171_v45, %v1656_v22  ;;  %v512_v48 = vpop.f32.mrb[13].mxu0  ;;  %v576_v49 = vpop.f32.mrb[13].mxu1 }
 0x151   : > { %1107 = vst [vmem:[%s1668_s24 + $0x20] sm:$0xff] %v1047_v42   ;;  %1115 = vst [vmem:[%s1668_s24 + $0x60] sm:$0xff] %v1087_v43   ;;  %v513_v50 = vadd.f32 %v1656_v22, %v512_v48  ;;  %v577_v51 = vadd.f32 %v1656_v22, %v576_v49  ;;  %v1156_v52 = vpop.f32.mrb[14].mxu0  ;;  %v1172_v53 = vpop.f32.mrb[14].mxu1 }
 0x152   : > { %v524_v54 = vadd.f32 %v1156_v52, %v1656_v22  ;;  %v588_v55 = vadd.f32 %v1172_v53, %v1656_v22  ;;  %v515_v56 = vpop.f32.mrb[15].mxu0  ;;  %v579_v57 = vpop.f32.mrb[15].mxu1  ;;  %v605_v60 = vmax.f32 %v521_v46, 0.0  ;;  %v621_v61 = vmax.f32 %v585_v47, 0.0 }
 0x153   : > { %v516_v58 = vadd.f32 %v1656_v22, %v515_v56  ;;  %v580_v59 = vadd.f32 %v1656_v22, %v579_v57  ;;  %v603_v0 = vmax.f32 %v513_v50, 0.0  ;;  %v619_v1 = vmax.f32 %v577_v51, 0.0 }
 0x154   : > { %v606_v62 = vmax.f32 %v524_v54, 0.0  ;;  %v622_v63 = vmax.f32 %v588_v55, 0.0 }
 0x155   : > { %v604_v2 = vmax.f32 %v516_v58, 0.0  ;;  %v620_v3 = vmax.f32 %v580_v59, 0.0 }
 0x156   : > { %v1062_v4 = vpack.c.bf16 %v606_v62, %v605_v60  ;;  %v1102_v5 = vpack.c.bf16 %v622_v63, %v621_v61 }
 0x157   : > { %v1057_v22 = vpack.c.bf16 %v604_v2, %v603_v0  ;;  %v1097_v6 = vpack.c.bf16 %v620_v3, %v619_v1 }
 0x158   : > { %1110 = vst [vmem:[%s1668_s24 + $0x38] sm:$0xff] %v1062_v4   ;;  %1118 = vst [vmem:[%s1668_s24 + $0x78] sm:$0xff] %v1102_v5  }
 0x159   : > { %1109 = vst [vmem:[%s1668_s24 + $0x30] sm:$0xff] %v1057_v22   ;;  %1117 = vst [vmem:[%s1668_s24 + $0x70] sm:$0xff] %v1097_v6  }
 0x15a   : > { %1344 = shalt.err (!%p1341_p5)
}
 0x15b   : > { %s1345_s6 = scalar_lea.hbm %s1711_s15, 2048  ;;  %s1349_s19 = scalar_lea.hbm %s1769_s3, 4096 }
 0x15c   : > { %p1346_p9 = scmp.ne.s32.totalorder %s1711_s15, %s1345_s6  ;;  %p1350_p3 = scmp.lt.u32.totalorder %s1711_s15, %s1769_s3 }
 0x15d   : > { %p1351_p7 = scmp.lt.u32.totalorder %s1349_s19, %s1345_s6  ;;  %p1353_p4 = scmp.lt.u32.totalorder %s1345_s6, %s1711_s15 }
 0x15e   : > { %p1347_p1 = pnand %p1346_p9, %p1546_p10 }
 0x15f   : > { %p1352_p13 = por %p1351_p7, %p1350_p3 }
 0x160   : > { %p1348_p2 = pneg %p1347_p1 }
 0x161   : > { %p1354_p6 = por %p1353_p4, %p1352_p13 }
 0x163   : > { %p1355_p8 = pnand %p1354_p6, %p1348_p2 }
 0x165   : > { %1358 = shalt.err (!%p1355_p8)
}
 0x166   : > { %s1425_s24 = smov 64   ;;  %s1426_s10 = smov 4  }
 0x167   : > { %1183 = dma.vmem_to_hbm [thread:$0]  (%p1546_p10), %s1713_s11, 2048, %s1711_s15, %s784_s25, %s1425_s24, %s1425_s24, %s1426_s10  }
 0x168 PF: > { %s813_s9 = sand.u32 1, %s1397_s12   ;;  %p1787_p12 = scmp.ne.s32.totalorder %s1777_s23, 0 }
 0x169   : > { %p1788_p11 = scmp.ge.s32.totalorder %s1417_s17, 2  ;;  %s814_s18 = scalar_lea.sflag [#allocation4], %s813_s9 }
 0x16b   : > { %p1194_p0 = pnand %p1788_p11, %p1787_p12 }
 0x16d   : > { %1392 = dma.done.wait (!%p1194_p0), %s814_s18, 2048  }
 0x16e   : > { %1394 = vsyncadd (!%p1194_p0), %s814_s18, 4294965248  ;;  %s20_s17 = sadd.s32 1, %s1417_s17   ;;  %s1789_s12 = smov %s1401_s13 }
 0x16f   : > { %p17_p5 = scmp.ge.s32.totalorder %s20_s17, 4   ;;  %s1790_s13 = smov %s1405_s14 }
 0x170   : > { %s1791_s14 = smov %s1555_s5  ;;  %s1792_s15 = smov %s1413_s16 }
 0x171   : > { %s1793_s16 = smov %s1795_s28  ;;  %19 = sbr.rel (!%p17_p5) target bundleno = 7 (0x7), region = 85 }
 0x178   :  { %819 = vsyncpa [#allocation3], 1 }
 0x179   :  { %821 = vsyncpa [#allocation3 + $0x1], 1 }
 0x17a   :  { %822 = vsyncpa [#allocation6], 1 }
 0x17b   :  { %823 = vsyncpa [#allocation4], 1 }
 0x17c   :  { %825 = vsyncpa [#allocation4 + $0x1], 1 }

</bundles_post_ra>
